<compile_context>
chip_gen: v6e
topology: v6e:2x2x1
jax: 0.10.0
libtpu: 0.0.40
codegen_flags: <defaults>
</compile_context>

<pallas_src>
import functools
import math

import jax
import jax.numpy as jnp
from jax.experimental import pallas as pl
from jax.experimental.pallas import tpu as pltpu


# ----------------------------------------------------------------------------
# helpers
# ----------------------------------------------------------------------------
def _round_up(x, m):
    return ((x + m - 1) // m) * m


def _pad2(a, rows, cols):
    return jnp.pad(a, ((0, rows - a.shape[0]), (0, cols - a.shape[1])))


def _vmem_budget_bytes():
    """Per-generation VMEM budget (leave headroom under physical capacity)."""
    cap = 64 * 1024 * 1024  # conservative fallback (v7x-sized)
    try:
        cap = int(pltpu.get_tpu_info().vmem_capacity_bytes)
    except Exception:
        pass
    # v5e/v6e (128 MiB) -> ~96 MiB usable here; v7x (64 MiB) -> ~48 MiB.
    return min(int(cap * 3 // 4), 100 * 1024 * 1024)


def _default_adj_dtype():
    """1-byte adjacency on chips with cheap bf16 converts; bf16 elsewhere."""
    # TODO(synk): use the native fp8 MXU path on v7x instead of int8->bf16 upcast.
    try:
        kind = jax.devices()[0].device_kind.lower()
    except Exception:
        return jnp.bfloat16
    if any(t in kind for t in ("v6", "v7", "7x", "trillium")):
        return jnp.int8
    return jnp.bfloat16


def _pick_tile(n, granule, target):
    """Pick (tile, padded_extent): tile a multiple of `granule`, <= ~target,
    preferring tiles that divide the granule-padded extent (zero pad waste)."""
    n_pad = _round_up(max(n, 1), granule)
    m = n_pad // granule
    tmax = max(1, target // granule)
    if m <= tmax:
        return n_pad, n_pad                      # single tile, full extent
    best = 1
    for d in range(tmax, 0, -1):
        if m % d == 0:
            best = d
            break
    tile = best * granule
    if tile >= min(512, target):
        return tile, n_pad                       # zero waste, decent tile
    tile = tmax * granule                        # accept some pad waste instead of
    return tile, _round_up(n_pad, tile)          # paying per-step overhead forever


# ----------------------------------------------------------------------------
# kernel 1: batched per-src-type Linear    Wh_all = X @ [W_e1^T | W_e2^T | ...]
#   (bias handled post-aggregation; a zero-padded lane of every relation block
#    is set to 1.0 so the aggregation MXU also produces the in-degree)
# ----------------------------------------------------------------------------
def _linear_kernel(x_ref, wt_ref, wh_ref, *, ones_col, block_cols):
    wh = jnp.dot(x_ref[...], wt_ref[...], preferred_element_type=jnp.float32)
    if ones_col is not None:
        col = jax.lax.broadcasted_iota(jnp.int32, wh.shape, 1)
        wh = jnp.where(col % block_cols == ones_col, 1.0, wh)
    wh_ref[...] = wh.astype(wh_ref.dtype)


def _linear(x_pad, wt_pad, *, tile_m, out_dtype, ones_col, block_cols, vmem_limit):
    n_rows, f_in_pad = x_pad.shape
    n_cols = wt_pad.shape[1]
    kernel = functools.partial(_linear_kernel, ones_col=ones_col,
                               block_cols=block_cols)
    return pl.pallas_call(
        kernel,
        out_shape=jax.ShapeDtypeStruct((n_rows, n_cols), out_dtype),
        grid=(n_rows // tile_m,),
        in_specs=[
            pl.BlockSpec((tile_m, f_in_pad), lambda i: (i, 0)),     # X row tile
            pl.BlockSpec((f_in_pad, n_cols), lambda i: (0, 0)),     # W^T resident
        ],
        out_specs=pl.BlockSpec((tile_m, n_cols), lambda i: (i, 0)),
        compiler_params=pltpu.CompilerParams(
            dimension_semantics=("parallel",),
            vmem_limit_bytes=vmem_limit,
        ),
        cost_estimate=pl.CostEstimate(
            flops=int(2 * n_rows * f_in_pad * n_cols),
            transcendentals=0,
            bytes_accessed=int(x_pad.size * x_pad.dtype.itemsize
                               + wt_pad.size * wt_pad.dtype.itemsize
                               + n_rows * n_cols * jnp.dtype(out_dtype).itemsize),
        ),
    )(x_pad, wt_pad)


# ----------------------------------------------------------------------------
# kernel 2: per-relation mean aggregation
#   grid = (dst tiles [parallel], src tiles [arbitrary reduction])
#   degree + bias + cross-etype 'sum' all fused in-kernel
# ----------------------------------------------------------------------------
def _agg_kernel(*refs, has_prev, ones_col, wh_resident, tile_src):
    if has_prev:
        wh_ref, adj_ref, b_ref, prev_ref, out_ref = refs[:5]
        scratch = refs[5:]
    else:
        wh_ref, adj_ref, b_ref, out_ref = refs[:4]
        prev_ref = None
        scratch = refs[4:]
    acc_ref = scratch[0]
    deg_ref = scratch[1] if ones_col is None else None

    k = pl.program_id(1)

    @pl.when(k == 0)
    def _():
        acc_ref[...] = jnp.zeros_like(acc_ref)
        if deg_ref is not None:
            deg_ref[...] = jnp.zeros_like(deg_ref)

    if wh_resident:
        # Wh stays in VMEM across the whole grid; slice the current src chunk.
        start = pl.multiple_of(k * tile_src, tile_src)
        wh = wh_ref[pl.ds(start, tile_src), :]
    else:
        wh = wh_ref[...]

    a = adj_ref[...].astype(wh.dtype)     # no-op when A already streams as bf16
    acc_ref[...] += jnp.dot(a, wh, preferred_element_type=jnp.float32)
    if deg_ref is not None:               # fallback only when out_size % 128 == 0
        deg_ref[...] += jnp.sum(a, axis=-1, keepdims=True, dtype=jnp.float32)

    @pl.when(k == pl.num_programs(1) - 1)
    def _():
        acc = acc_ref[...]
        if ones_col is not None:
            deg = acc[:, ones_col:ones_col + 1]     # degree came out of the MXU
        else:
            deg = deg_ref[...]
        has_edge = deg > 0.0
        dinv = jnp.where(has_edge, 1.0 / jnp.maximum(deg, 1.0), 0.0)
        # bias added after the mean, gated on deg>0 (== adding it before the mean)
        res = acc * dinv + jnp.where(has_edge, b_ref[...], 0.0)
        if prev_ref is not None:                    # fused cross-etype 'sum'
            res = prev_ref[...] + res
        out_ref[...] = res.astype(out_ref.dtype)


def _aggregate(wh_all, adj, b_pad, prev, *, rel_idx, tile_dst, tile_src,
               f_out_pad, wh_resident, ones_col, vmem_limit):
    n_dst_pad, n_src_pad = adj.shape
    grid = (n_dst_pad // tile_dst, n_src_pad // tile_src)

    if wh_resident:
        wh_spec = pl.BlockSpec((n_src_pad, f_out_pad),
                               lambda i, k, r=rel_idx: (0, r))   # fetched once
    else:
        wh_spec = pl.BlockSpec((tile_src, f_out_pad),
                               lambda i, k, r=rel_idx: (k, r))   # streamed over k

    in_specs = [
        wh_spec,
        pl.BlockSpec((tile_dst, tile_src), lambda i, k: (i, k)),  # A tile
        pl.BlockSpec((1, f_out_pad), lambda i, k: (0, 0)),        # bias resident
    ]
    inputs = [wh_all, adj, b_pad]
    io_aliases = {}
    if prev is not None:
        in_specs.append(pl.BlockSpec((tile_dst, f_out_pad), lambda i, k: (i, 0)))
        inputs.append(prev)
        io_aliases = {3: 0}      # accumulate straight into the existing dst buffer

    scratch = [pltpu.VMEM((tile_dst, f_out_pad), jnp.float32)]    # f32 accumulator
    if ones_col is None:
        scratch.append(pltpu.VMEM((tile_dst, 1), jnp.float32))    # degree fallback

    kernel = functools.partial(_agg_kernel, has_prev=prev is not None,
                               ones_col=ones_col, wh_resident=wh_resident,
                               tile_src=tile_src)

    wh_read = (n_src_pad if wh_resident else grid[0] * n_src_pad) * f_out_pad
    bytes_acc = int(adj.size * adj.dtype.itemsize
                    + wh_read * wh_all.dtype.itemsize
                    + n_dst_pad * f_out_pad * 4 * (2 if prev is not None else 1))

    return pl.pallas_call(
        kernel,
        out_shape=jax.ShapeDtypeStruct((n_dst_pad, f_out_pad), jnp.float32),
        grid=grid,
        in_specs=in_specs,
        out_specs=pl.BlockSpec((tile_dst, f_out_pad), lambda i, k: (i, 0)),
        scratch_shapes=scratch,
        input_output_aliases=io_aliases,
        compiler_params=pltpu.CompilerParams(
            dimension_semantics=("parallel", "arbitrary"),
            vmem_limit_bytes=vmem_limit,
        ),
        cost_estimate=pl.CostEstimate(
            flops=int(2 * n_dst_pad * n_src_pad * f_out_pad),
            transcendentals=0, bytes_accessed=bytes_acc),
    )(*inputs)


# ----------------------------------------------------------------------------
# prepared graph (structure preprocessing hoisted out of the per-call path)
# ----------------------------------------------------------------------------
class PreparedGraph:
    def __init__(self, relations, src_meta, dst_meta, wt_cat):
        self.relations = relations
        self.src_meta = src_meta
        self.dst_meta = dst_meta
        self.wt_cat = wt_cat


# ----------------------------------------------------------------------------
# the layer
# ----------------------------------------------------------------------------
class HeteroRGCNLayer:
    """JAX/Pallas port of the PyTorch HeteroRGCNLayer."""

    def __init__(self, in_size, out_size, etypes, key,
                 compute_dtype=jnp.float32,   # dtype of the per-etype Linear matmul
                 wh_dtype=jnp.bfloat16,       # dtype Wh is stored in for aggregation
                 adj_dtype=None,              # adjacency carrier (None = per-chip)
                 src_tile_target=1024, dst_tile_target=512):
        self.in_size = in_size
        self.out_size = out_size
        self.compute_dtype = jnp.dtype(compute_dtype)
        self.wh_dtype = jnp.dtype(wh_dtype)
        self.adj_dtype = (jnp.dtype(adj_dtype) if adj_dtype is not None
                          else jnp.dtype(_default_adj_dtype()))
        self.src_tile_target = src_tile_target
        self.dst_tile_target = dst_tile_target
        self._vmem_budget = _vmem_budget_bytes()

        self.f_in_pad = _round_up(in_size, 128)    # lane-dense contraction dim
        self.f_out_pad = _round_up(out_size, 128)  # lane-dense output dim
        # Spare output lane used to fold the degree computation into the MXU.
        self.ones_col = out_size if self.f_out_pad > out_size else None

        # Deterministic nn.Linear-style init: U(-1/sqrt(in), 1/sqrt(in))
        k = 1.0 / math.sqrt(in_size)
        self.weight = {}
        self._wt_pad = {}
        self._b_pad = {}
        for name in etypes:
            key, kw, kb = jax.random.split(key, 3)
            w = jax.random.uniform(kw, (out_size, in_size), jnp.float32, -k, k)
            b = jax.random.uniform(kb, (out_size,), jnp.float32, -k, k)
            self.weight[name] = (w, b)
            self._wt_pad[name] = _pad2(
                w.T.astype(self.compute_dtype), self.f_in_pad, self.f_out_pad)
            self._b_pad[name] = _pad2(b.reshape(1, out_size), 1, self.f_out_pad)

    # ---- one-time graph-structure preprocessing --------------------------------
    def prepare(self, graph):
        src_meta, dst_meta = {}, {}
        for (s, e, d), adj in graph.items():
            n_dst, n_src = adj.shape
            if s not in src_meta:
                tile_src, n_src_pad = _pick_tile(n_src, 128, self.src_tile_target)
                src_meta[s] = dict(n_src=n_src, n_src_pad=n_src_pad,
                                   tile_src=tile_src, etypes=[])
            elif src_meta[s]["n_src"] != n_src:
                raise ValueError(f"inconsistent src node count for {s}")
            if e not in src_meta[s]["etypes"]:
                src_meta[s]["etypes"].append(e)
            if d not in dst_meta:
                # dst granule 32 keeps 1-byte A tiles sublane-legal; >=2 dst tiles
                # appear naturally for big dst types (v7x 2-TC load balance).
                tile_dst, n_dst_pad = _pick_tile(n_dst, 32, self.dst_tile_target)
                dst_meta[d] = dict(n_dst=n_dst, n_dst_pad=n_dst_pad,
                                   tile_dst=tile_dst)
            elif dst_meta[d]["n_dst"] != n_dst:
                raise ValueError(f"inconsistent dst node count for {d}")

        # Concatenated W^T per src type: one Linear per src type fills the MXU
        # N dimension and reads X once for all relations sharing that src.
        wt_cat = {s: jnp.concatenate([self._wt_pad[e] for e in m["etypes"]], axis=1)
                  for s, m in src_meta.items()}

        relations = []
        for (s, e, d), adj in graph.items():
            sm, dm = src_meta[s], dst_meta[d]
            adj_pad = _pad2(adj.astype(self.adj_dtype),
                            dm["n_dst_pad"], sm["n_src_pad"])
            relations.append(dict(srctype=s, etype=e, dsttype=d, adj=adj_pad,
                                  rel_idx=sm["etypes"].index(e)))
        return PreparedGraph(relations, src_meta, dst_meta, wt_cat)

    # ---- forward ----------------------------------------------------------------
    def __call__(self, graph, feat_dict):
        """
        graph: dict canonical etype (srctype, etype, dsttype) -> dense 0/1
               adjacency (N_dst, N_src), OR a PreparedGraph from self.prepare().
        feat_dict: dict ntype -> (N_ntype, in_size) features.
        Returns dict ntype -> (N_ntype, out_size) for ntypes receiving >=1 relation.
        """
        if not isinstance(graph, PreparedGraph):
            graph = self.prepare(graph)

        budget = self._vmem_budget
        f_out_pad = self.f_out_pad

        # 1) one batched Linear per src node type present in feat_dict
        wh_all = {}
        for s, m in graph.src_meta.items():
            if s not in feat_dict:
                continue
            x_pad = _pad2(feat_dict[s].astype(self.compute_dtype),
                          m["n_src_pad"], self.f_in_pad)
            wh_all[s] = _linear(
                x_pad, graph.wt_cat[s], tile_m=m["tile_src"],
                out_dtype=self.wh_dtype, ones_col=self.ones_col,
                block_cols=f_out_pad, vmem_limit=budget)

        # 2) per-relation mean aggregation fused with the cross-etype 'sum'
        out_pad = {}
        for rel in graph.relations:
            s, d = rel["srctype"], rel["dsttype"]
            if s not in feat_dict:
                continue
            sm, dm = graph.src_meta[s], graph.dst_meta[d]
            tile_src, tile_dst = sm["tile_src"], dm["tile_dst"]
            n_src_pad = sm["n_src_pad"]
            prev = out_pad.get(d)

            # Keep Wh resident in VMEM whenever it fits the VMEM budget.
            fixed = (2 * tile_dst * tile_src * self.adj_dtype.itemsize   # A (x2)
                     + 2 * f_out_pad * 4                                 # bias (x2)
                     + 2 * tile_dst * f_out_pad * 4                      # out (x2)
                     + (2 * tile_dst * f_out_pad * 4 if prev is not None else 0)
                     + tile_dst * f_out_pad * 4 + tile_dst * 4)          # scratch
            wh_resident = (fixed + 2 * n_src_pad * f_out_pad * self.wh_dtype.itemsize
                           <= int(0.9 * budget))

            out_pad[d] = _aggregate(
                wh_all[s], rel["adj"], self._b_pad[rel["etype"]], prev,
                rel_idx=rel["rel_idx"], tile_dst=tile_dst, tile_src=tile_src,
                f_out_pad=f_out_pad, wh_resident=wh_resident,
                ones_col=self.ones_col, vmem_limit=budget)

        return {d: out_pad[d][: graph.dst_meta[d]["n_dst"], : self.out_size]
                for d in out_pad}


# ----------------------------------------------------------------------------
# pure-JAX reference (matches the PyTorch module semantics)
# ----------------------------------------------------------------------------
def _reference(layer, graph, feat_dict):
    out = {}
    for (srctype, etype, dsttype), adj in graph.items():
        if srctype not in feat_dict:
            continue
        w, b = layer.weight[etype]
        wh = feat_dict[srctype] @ w.T + b
        adj_f = adj.astype(jnp.float32)
        deg = adj_f.sum(axis=1, keepdims=True)
        mean = jnp.where(deg > 0, (adj_f @ wh) / jnp.maximum(deg, 1.0), 0.0)
        out[dsttype] = out.get(dsttype, 0.0) + mean
    return out


if __name__ == "__main__":
    key = jax.random.PRNGKey(0)

    in_size, out_size = 32, 32
    n_user, n_item = 16, 8

    canonical_etypes = [
        ("user", "follows", "user"),
        ("user", "buys", "item"),
        ("item", "bought_by", "user"),
    ]
    etypes = [e for (_, e, _) in canonical_etypes]

    key, k_layer, k_fu, k_fi, k_a0, k_a1, k_a2 = jax.random.split(key, 7)
    layer = HeteroRGCNLayer(in_size, out_size, etypes, k_layer)

    feat_dict = {
        "user": jax.random.normal(k_fu, (n_user, in_size), jnp.float32),
        "item": jax.random.normal(k_fi, (n_item, in_size), jnp.float32),
    }

    # Dense 0/1 adjacency per canonical etype: (N_dst, N_src)
    graph = {
        ("user", "follows", "user"):
            jax.random.bernoulli(k_a0, 0.3, (n_user, n_user)).astype(jnp.float32),
        ("user", "buys", "item"):
            jax.random.bernoulli(k_a1, 0.3, (n_item, n_user)).astype(jnp.float32),
        ("item", "bought_by", "user"):
            jax.random.bernoulli(k_a2, 0.3, (n_user, n_item)).astype(jnp.float32),
    }

    prepared = layer.prepare(graph)   # one-time structure preprocessing (cast/pad A)
    out = layer(prepared, feat_dict)
    out = jax.block_until_ready(out)

    ref = _reference(layer, graph, feat_dict)
    for ntype in ref:
        assert out[ntype].shape == ref[ntype].shape, ntype
        # Wh is rounded to bf16 for the HBM-bound aggregation matmul (~1e-3 rel
        # error vs the f32 reference); degrees, adjacency and bias are exact.
        assert jnp.allclose(out[ntype], ref[ntype], atol=2e-2, rtol=2e-2), ntype

    # TODO(synk): true sparse (CSR/COO segment-mean) aggregation is not expressed
    # here; the DGL graph is modeled as one dense 0/1 adjacency per relation.
    print("KERNEL_OK")
</pallas_src>

<mosaic_0001>
module attributes {stable_mosaic.version = 11 : i64} {
  func.func @_linear_kernel(%arg0: i32, %arg1: memref<128x128xf32, #tpu.memory_space<vmem>>, %arg2: memref<128x256xf32, #tpu.memory_space<vmem>>, %arg3: memref<128x256xbf16, #tpu.memory_space<vmem>>) attributes {dimension_semantics = [#tpu.dimension_semantics<parallel>], iteration_bounds = array<i64: 1>, scalar_prefetch = 0 : i64, scratch_operands = 0 : i64, tpu.core_type = #tpu.core_type<tc>, window_params = [{transform_indices = @transform_0, window_bounds = array<i64: 128, 128>}, {pipeline_mode = #tpu.pipeline_mode<synchronous>, transform_indices = @transform_1, window_bounds = array<i64: 128, 256>}, {transform_indices = @transform_2, window_bounds = array<i64: 128, 256>}]} {
    %c0 = arith.constant 0 : index
    %c0_0 = arith.constant 0 : index
    %0 = vector.load %arg1[%c0, %c0_0] : memref<128x128xf32, #tpu.memory_space<vmem>>, vector<128x128xf32>
    %c0_1 = arith.constant 0 : index
    %c0_2 = arith.constant 0 : index
    %1 = vector.load %arg2[%c0_1, %c0_2] : memref<128x256xf32, #tpu.memory_space<vmem>>, vector<128x256xf32>
    %cst = arith.constant dense<0.000000e+00> : vector<128x256xf32>
    %2 = tpu.matmul %0, %1, %cst {dimension_numbers = #tpu.dot_dimension_numbers<[1], [0], [0], [1], [0, 0, 1, 1], [], []>} : vector<128x128xf32>, vector<128x256xf32>, vector<128x256xf32> -> vector<128x256xf32>
    %3 = tpu.iota {dimensions = array<i32: 1>} : vector<128x256xi32>
    %c128_i32 = arith.constant 128 : i32
    %c0_i32 = arith.constant 0 : i32
    %4 = arith.cmpi eq, %c128_i32, %c0_i32 : i32
    %c1_i32 = arith.constant 1 : i32
    %5 = arith.select %4, %c1_i32, %c128_i32 : i32
    %6 = vector.broadcast %5 : i32 to vector<128x256xi32>
    %7 = arith.remsi %3, %6 : vector<128x256xi32>
    %c0_i32_3 = arith.constant 0 : i32
    %8 = vector.broadcast %c0_i32_3 : i32 to vector<128x256xi32>
    %9 = arith.cmpi ne, %7, %8 : vector<128x256xi32>
    %c0_i32_4 = arith.constant 0 : i32
    %10 = vector.broadcast %c0_i32_4 : i32 to vector<128x256xi32>
    %11 = arith.cmpi slt, %7, %10 : vector<128x256xi32>
    %c0_i32_5 = arith.constant 0 : i32
    %12 = arith.cmpi slt, %5, %c0_i32_5 : i32
    %13 = vector.broadcast %12 : i1 to vector<128x256xi1>
    %14 = vector.broadcast %13 : vector<128x256xi1> to vector<128x256xi1>
    %15 = arith.xori %11, %14 : vector<128x256xi1>
    %16 = arith.andi %15, %9 : vector<128x256xi1>
    %17 = vector.broadcast %5 : i32 to vector<128x256xi32>
    %18 = arith.addi %7, %17 : vector<128x256xi32>
    %19 = arith.select %16, %18, %7 : vector<128x256xi1>, vector<128x256xi32>
    %c32_i32 = arith.constant 32 : i32
    %20 = vector.broadcast %c32_i32 : i32 to vector<128x256xi32>
    %21 = arith.cmpi eq, %19, %20 : vector<128x256xi32>
    %cst_6 = arith.constant 1.000000e+00 : f32
    %22 = vector.broadcast %cst_6 : f32 to vector<128x256xf32>
    %23 = arith.select %21, %22, %2 : vector<128x256xi1>, vector<128x256xf32>
    %24 = arith.truncf %23 : vector<128x256xf32> to vector<128x256xbf16>
    %c0_7 = arith.constant 0 : index
    %c0_8 = arith.constant 0 : index
    %25 = vector.load %arg3[%c0_7, %c0_8] : memref<128x256xbf16, #tpu.memory_space<vmem>>, vector<128x256xbf16>
    tpu.vector_store %arg3[%c0_7, %c0_8], %24 {strides = array<i32>} : memref<128x256xbf16, #tpu.memory_space<vmem>>, vector<128x256xbf16>,
    return
  }
  func.func @transform_0(%arg0: i32) -> (i32, i32) {
    %c0_i32 = arith.constant 0 : i32
    %c0_i32_0 = arith.constant 0 : i32
    return %arg0, %c0_i32 : i32, i32
  }
  func.func @transform_1(%arg0: i32) -> (i32, i32) {
    %c0_i32 = arith.constant 0 : i32
    %c0_i32_0 = arith.constant 0 : i32
    %c0_i32_1 = arith.constant 0 : i32
    return %c0_i32, %c0_i32_0 : i32, i32
  }
  func.func @transform_2(%arg0: i32) -> (i32, i32) {
    %c0_i32 = arith.constant 0 : i32
    %c0_i32_0 = arith.constant 0 : i32
    return %arg0, %c0_i32 : i32, i32
  }
}

</mosaic_0001>

<bundles_post_ra>
// kernel: tpu_custom_call.1
= control target key start
LH: loop header
LB: loop body
LE: loop exit
PB: predicated region body
PF: predicated region fallthrough
CT: control target
= control target key end

     0   :  { %7 = vsyncpa [#allocation3], 0  ;;  %s704_s0 = inlined_call_operand.hbm [shape: f32[128,128], index: 0, kind: input, shape index: {}]   ;;  %s705_s1 = inlined_call_operand.hbm [shape: f32[128,256], index: 1, kind: input, shape index: {}]   ;;  %s706_s2 = inlined_call_operand.hbm [shape: bf16[128,256], index: 2, kind: output, shape index: {}]  }
   0x1   :  { %8 = vsyncpa [#allocation6], 0 }
   0x2   :  { %9 = vsyncpa [#allocation4], 0  ;;  %s578_s9 = smov [#allocation2]  }
   0x3   :  { %s15_s10 = sshll.u32 %s578_s9, 4  ;;  %s16_s10 = int_to_ptr.vmem [resolvable:$true] %s15_s10 }
   0x4   :  { %s520_s11 = scalar_lea.vmem %s16_s10, 2048  ;;  %p525_p1 = scmp.lt.s32.totalorder %s16_s10, %s16_s10 }
   0x5   :  { %p521_p0 = scmp.ne.s32.totalorder %s16_s10, %s520_s11  ;;  %p526_p2 = scmp.lt.s32.totalorder %s520_s11, %s520_s11 }
   0x7   :  { %p527_p3 = por %p526_p2, %p525_p1 }
   0x9   :  { %p528_p4 = pnand %p527_p3, %p521_p0 }
   0xb   :  { %531 = shalt.err (!%p528_p4)
}
   0xc   :  { %s579_s12 = smov 128   ;;  %s580_s13 = smov 8  }
   0xd   :  { %21 = dma.hbm_to_vmem [thread:$0]  %s704_s0, 2048, %s16_s10, [#allocation3], %s579_s12, %s579_s12, %s580_s13  }
   0xe   :  { %s581_s16 = smov [#allocation5]  }
   0xf   :  { %s27_s17 = sshll.u32 %s581_s16, 4  ;;  %s28_s17 = int_to_ptr.vmem [resolvable:$true] %s27_s17 }
  0x10   :  { %s540_s18 = scalar_lea.vmem %s28_s17, 4096  ;;  %p545_p6 = scmp.lt.s32.totalorder %s28_s17, %s28_s17 }
  0x11   :  { %p541_p5 = scmp.ne.s32.totalorder %s28_s17, %s540_s18  ;;  %p546_p7 = scmp.lt.s32.totalorder %s540_s18, %s540_s18 }
  0x13   :  { %p547_p8 = por %p546_p7, %p545_p6 }
  0x15   :  { %p548_p9 = pnand %p547_p8, %p541_p5 }
  0x17   :  { %551 = shalt.err (!%p548_p9)
}
  0x18   :  { %s582_s19 = smov 256   ;;  %s583_s20 = smov 16  }
  0x19   :  { %33 = dma.hbm_to_vmem [thread:$0]  %s705_s1, 4096, %s28_s17, [#allocation6], %s582_s19, %s582_s19, %s583_s20  }
  0x1a   :  { %572 = dma.done.wait [#allocation3], 2048  }
  0x1b   :  { %573 = vsyncadd [#allocation3], 4294965248 }
  0x1c   :  { %574 = dma.done.wait [#allocation6], 4096  }
  0x1d   :  { %575 = vsyncadd [#allocation6], 4294963200  ;;  %v584_v0 = vmov 0.0   ;;  %v87_v1 = vld [vmem:[#allocation5 + $0xf8] sm:$0xff]  ;;  %v86_v2 = vld [vmem:[#allocation5 + $0xf0] sm:$0xff]  ;;  %v249_v49 = vlaneseq  ;;  %s585_s0 = smov [#allocation7]  }
  0x1e   :  { %152 = vmatprep.mubr.f32.mxu0 %v584_v0  ;;  %200 = vmatprep.mubr.f32.mxu1 %v584_v0  ;;  %v85_v3 = vld [vmem:[#allocation5 + $0xe8] sm:$0xff]  ;;  %v84_v4 = vld [vmem:[#allocation5 + $0xe0] sm:$0xff]  ;;  %v83_v5 = vld [vmem:[#allocation5 + $0xd8] sm:$0xff]  ;;  %s427_s1 = sshll.u32 %s585_s0, 4  ;;  %s428_s1 = int_to_ptr.vmem [resolvable:$true] %s427_s1 }
  0x1f   :  { %88 = vmatprep.subr.mxu0 %v87_v1  ;;  %472 = vmatprep.subr.mxu1 %v87_v1  ;;  %v82_v6 = vld [vmem:[#allocation5 + $0xd0] sm:$0xff]  ;;  %v81_v7 = vld [vmem:[#allocation5 + $0xc8] sm:$0xff]  ;;  %v80_v8 = vld [vmem:[#allocation5 + $0xc0] sm:$0xff]  ;;  %v626_v50 = vand.u32 127, %v249_v49  ;;  %s552_s23 = scalar_lea.vmem %s428_s1, 2048  ;;  %p557_p11 = scmp.lt.s32.totalorder %s428_s1, %s428_s1 }
  0x20   :  { %89 = vmatpush1.msra.mxu0 %v86_v2  ;;  %488 = vmatpush1.msra.mxu1 %v86_v2  ;;  %v79_v9 = vld [vmem:[#allocation5 + $0xb8] sm:$0xff]  ;;  %v78_v10 = vld [vmem:[#allocation5 + $0xb0] sm:$0xff]  ;;  %v77_v11 = vld [vmem:[#allocation5 + $0xa8] sm:$0xff]  ;;  %p553_p10 = scmp.ne.s32.totalorder %s428_s1, %s552_s23  ;;  %p558_p12 = scmp.lt.s32.totalorder %s552_s23, %s552_s23 }
  0x21   :  { %90 = vmatprep.subr.mxu0 %v85_v3  ;;  %473 = vmatprep.subr.mxu1 %v85_v3  ;;  %v76_v12 = vld [vmem:[#allocation5 + $0xa0] sm:$0xff]  ;;  %v75_v13 = vld [vmem:[#allocation5 + $0x98] sm:$0xff]  ;;  %v74_v14 = vld [vmem:[#allocation5 + $0x90] sm:$0xff]  ;;  %v251_v51 = vadd.s32 128, %v626_v50  ;;  %vm276_vm0 = vcmp.eq.s32.totalorder %v626_v50, 32 }
  0x22   :  { %91 = vmatpush1.msra.mxu0 %v84_v4  ;;  %489 = vmatpush1.msra.mxu1 %v84_v4  ;;  %v73_v15 = vld [vmem:[#allocation5 + $0x88] sm:$0xff]  ;;  %v72_v16 = vld [vmem:[#allocation5 + $0x80] sm:$0xff]  ;;  %v71_v17 = vld [vmem:[#allocation5 + $0x78] sm:$0xff]  ;;  %p559_p13 = por %p558_p12, %p557_p11 }
  0x23   :  { %92 = vmatprep.subr.mxu0 %v83_v5  ;;  %474 = vmatprep.subr.mxu1 %v83_v5  ;;  %v70_v18 = vld [vmem:[#allocation5 + $0x70] sm:$0xff]  ;;  %v69_v19 = vld [vmem:[#allocation5 + $0x68] sm:$0xff]  ;;  %v68_v20 = vld [vmem:[#allocation5 + $0x60] sm:$0xff]  ;;  %v263_v52 = vand.u32 127, %v251_v51 }
  0x24   :  { %93 = vmatpush1.msra.mxu0 %v82_v6  ;;  %490 = vmatpush1.msra.mxu1 %v82_v6  ;;  %v67_v21 = vld [vmem:[#allocation5 + $0x58] sm:$0xff]  ;;  %v66_v22 = vld [vmem:[#allocation5 + $0x50] sm:$0xff]  ;;  %v65_v23 = vld [vmem:[#allocation5 + $0x48] sm:$0xff]  ;;  %p560_p0 = pnand %p559_p13, %p553_p10 }
  0x25   :  { %94 = vmatprep.subr.mxu0 %v81_v7  ;;  %475 = vmatprep.subr.mxu1 %v81_v7  ;;  %v64_v24 = vld [vmem:[#allocation5 + $0x40] sm:$0xff]  ;;  %v63_v25 = vld [vmem:[#allocation5 + $0x38] sm:$0xff]  ;;  %v62_v26 = vld [vmem:[#allocation5 + $0x30] sm:$0xff]  ;;  %vm630_vm1 = vcmp.eq.s32.totalorder %v263_v52, 32 }
  0x26   :  { %95 = vmatpush1.msra.mxu0 %v80_v8  ;;  %491 = vmatpush1.msra.mxu1 %v80_v8  ;;  %v61_v27 = vld [vmem:[#allocation5 + $0x28] sm:$0xff]  ;;  %v60_v28 = vld [vmem:[#allocation5 + $0x20] sm:$0xff]  ;;  %v59_v29 = vld [vmem:[#allocation5 + $0x18] sm:$0xff] }
  0x27   :  { %96 = vmatprep.subr.mxu0 %v79_v9  ;;  %476 = vmatprep.subr.mxu1 %v79_v9  ;;  %v58_v30 = vld [vmem:[#allocation5 + $0x10] sm:$0xff]  ;;  %v57_v31 = vld [vmem:[#allocation5 + $0x8] sm:$0xff]  ;;  %v56_v32 = vld [vmem:[#allocation5] sm:$0xff] }
  0x28   :  { %97 = vmatpush1.msra.mxu0 %v78_v10  ;;  %492 = vmatpush1.msra.mxu1 %v78_v10  ;;  %v40_v33 = vld [vmem:[#allocation2] sm:$0xff]  ;;  %v41_v35 = vld [vmem:[#allocation2 + $0x8] sm:$0xff]  ;;  %v42_v37 = vld [vmem:[#allocation2 + $0x10] sm:$0xff] }
  0x29   :  { %98 = vmatprep.subr.mxu0 %v77_v11  ;;  %477 = vmatprep.subr.mxu1 %v77_v11  ;;  %v48_v34 = vld [vmem:[#allocation2 + $0x40] sm:$0xff]  ;;  %v49_v36 = vld [vmem:[#allocation2 + $0x48] sm:$0xff]  ;;  %v50_v38 = vld [vmem:[#allocation2 + $0x50] sm:$0xff] }
  0x2a   :  { %99 = vmatpush1.msra.mxu0 %v76_v12  ;;  %493 = vmatpush1.msra.mxu1 %v76_v12  ;;  %v43_v39 = vld [vmem:[#allocation2 + $0x18] sm:$0xff]  ;;  %v44_v41 = vld [vmem:[#allocation2 + $0x20] sm:$0xff]  ;;  %v45_v43 = vld [vmem:[#allocation2 + $0x28] sm:$0xff] }
  0x2b   :  { %100 = vmatprep.subr.mxu0 %v75_v13  ;;  %478 = vmatprep.subr.mxu1 %v75_v13  ;;  %v51_v40 = vld [vmem:[#allocation2 + $0x58] sm:$0xff]  ;;  %v52_v42 = vld [vmem:[#allocation2 + $0x60] sm:$0xff]  ;;  %v53_v44 = vld [vmem:[#allocation2 + $0x68] sm:$0xff] }
  0x2c   :  { %101 = vmatpush1.msra.mxu0 %v74_v14  ;;  %494 = vmatpush1.msra.mxu1 %v74_v14  ;;  %v46_v45 = vld [vmem:[#allocation2 + $0x30] sm:$0xff]  ;;  %v47_v47 = vld [vmem:[#allocation2 + $0x38] sm:$0xff] }
  0x2d   :  { %102 = vmatprep.subr.mxu0 %v73_v15  ;;  %479 = vmatprep.subr.mxu1 %v73_v15  ;;  %v54_v46 = vld [vmem:[#allocation2 + $0x70] sm:$0xff]  ;;  %v55_v48 = vld [vmem:[#allocation2 + $0x78] sm:$0xff] }
  0x2e   :  { %103 = vmatpush1.msra.mxu0 %v72_v16  ;;  %495 = vmatpush1.msra.mxu1 %v72_v16 }
  0x2f   :  { %104 = vmatprep.subr.mxu0 %v71_v17  ;;  %480 = vmatprep.subr.mxu1 %v71_v17 }
  0x30   :  { %105 = vmatpush1.msra.mxu0 %v70_v18  ;;  %496 = vmatpush1.msra.mxu1 %v70_v18 }
  0x31   :  { %106 = vmatprep.subr.mxu0 %v69_v19  ;;  %481 = vmatprep.subr.mxu1 %v69_v19 }
  0x32   :  { %107 = vmatpush1.msra.mxu0 %v68_v20  ;;  %497 = vmatpush1.msra.mxu1 %v68_v20 }
  0x33   :  { %108 = vmatprep.subr.mxu0 %v67_v21  ;;  %482 = vmatprep.subr.mxu1 %v67_v21 }
  0x34   :  { %109 = vmatpush1.msra.mxu0 %v66_v22  ;;  %498 = vmatpush1.msra.mxu1 %v66_v22 }
  0x35   :  { %110 = vmatprep.subr.mxu0 %v65_v23  ;;  %483 = vmatprep.subr.mxu1 %v65_v23 }
  0x36   :  { %111 = vmatpush1.msra.mxu0 %v64_v24  ;;  %499 = vmatpush1.msra.mxu1 %v64_v24 }
  0x37   :  { %112 = vmatprep.subr.mxu0 %v63_v25  ;;  %484 = vmatprep.subr.mxu1 %v63_v25 }
  0x38   :  { %113 = vmatpush1.msra.mxu0 %v62_v26  ;;  %500 = vmatpush1.msra.mxu1 %v62_v26 }
  0x39   :  { %114 = vmatprep.subr.mxu0 %v61_v27  ;;  %485 = vmatprep.subr.mxu1 %v61_v27 }
  0x3a   :  { %115 = vmatpush1.msra.mxu0 %v60_v28  ;;  %501 = vmatpush1.msra.mxu1 %v60_v28 }
  0x3b   :  { %116 = vmatprep.subr.mxu0 %v59_v29  ;;  %486 = vmatprep.subr.mxu1 %v59_v29 }
  0x3c   :  { %117 = vmatpush1.msra.mxu0 %v58_v30  ;;  %502 = vmatpush1.msra.mxu1 %v58_v30 }
  0x3d   :  { %118 = vmatprep.subr.mxu0 %v57_v31  ;;  %487 = vmatprep.subr.mxu1 %v57_v31 }
  0x3e   :  { %119 = vmatpush1.msra.mxu0 %v56_v32  ;;  %503 = vmatpush1.msra.mxu1 %v56_v32 }
  0x3f   :  { %153 = vmatmul.mubr.f32.vlgmr.msra.gmra.mxu0 %v40_v33  ;;  %201 = vmatmul.mubr.f32.vlgmr.msra.gmra.mxu1 %v48_v34 }
  0x40   :  { %158 = vmatprep.mubr.f32.mxu0 %v584_v0  ;;  %206 = vmatprep.mubr.f32.mxu1 %v584_v0 }
  0x43   :  { %159 = vmatmul.mubr.f32.gmra.mxu0 %v41_v35  ;;  %207 = vmatmul.mubr.f32.gmra.mxu1 %v49_v36 }
  0x44   :  { %164 = vmatprep.mubr.f32.mxu0 %v584_v0  ;;  %212 = vmatprep.mubr.f32.mxu1 %v584_v0 }
  0x47   :  { %165 = vmatmul.mubr.f32.gmra.mxu0 %v42_v37  ;;  %213 = vmatmul.mubr.f32.gmra.mxu1 %v50_v38 }
  0x48   :  { %170 = vmatprep.mubr.f32.mxu0 %v584_v0  ;;  %218 = vmatprep.mubr.f32.mxu1 %v584_v0 }
  0x4b   :  { %171 = vmatmul.mubr.f32.gmra.mxu0 %v43_v39  ;;  %219 = vmatmul.mubr.f32.gmra.mxu1 %v51_v40 }
  0x4c   :  { %176 = vmatprep.mubr.f32.mxu0 %v584_v0  ;;  %224 = vmatprep.mubr.f32.mxu1 %v584_v0 }
  0x4f   :  { %177 = vmatmul.mubr.f32.gmra.mxu0 %v44_v41  ;;  %225 = vmatmul.mubr.f32.gmra.mxu1 %v52_v42 }
  0x50   :  { %182 = vmatprep.mubr.f32.mxu0 %v584_v0  ;;  %230 = vmatprep.mubr.f32.mxu1 %v584_v0 }
  0x53   :  { %183 = vmatmul.mubr.f32.gmra.mxu0 %v45_v43  ;;  %231 = vmatmul.mubr.f32.gmra.mxu1 %v53_v44 }
  0x54   :  { %188 = vmatprep.mubr.f32.mxu0 %v584_v0  ;;  %236 = vmatprep.mubr.f32.mxu1 %v584_v0 }
  0x57   :  { %189 = vmatmul.mubr.f32.gmra.mxu0 %v46_v45  ;;  %237 = vmatmul.mubr.f32.gmra.mxu1 %v54_v46 }
  0x58   :  { %194 = vmatprep.mubr.f32.mxu0 %v584_v0  ;;  %242 = vmatprep.mubr.f32.mxu1 %v584_v0 }
  0x5b   :  { %195 = vmatmul.mubr.f32.gmra.mxu0 %v47_v47  ;;  %243 = vmatmul.mubr.f32.gmra.mxu1 %v55_v48 }
  0xff   :  { %v154_v53 = vpop.f32.mrf.mxu0  ;;  %v202_v54 = vpop.f32.mrf.mxu1 }
 0x100   :  { %v278_v58 = vsel %vm276_vm0, 1.0, %v154_v53  ;;  %v294_v59 = vsel %vm276_vm0, 1.0, %v202_v54 }
 0x101   :  { %v156_v56 = vpop.f32.mrf.mxu0  ;;  %v204_v57 = vpop.f32.mrf.mxu1 }
 0x102   :  { %v279_v60 = vsel %vm630_vm1, 1.0, %v156_v56  ;;  %v295_v61 = vsel %vm630_vm1, 1.0, %v204_v57 }
 0x103   :  { %v456_v62 = vpack.c.bf16 %v279_v60, %v278_v58  ;;  %v464_v63 = vpack.c.bf16 %v295_v61, %v294_v59  ;;  %v160_v0 = vpop.f32.mrf.mxu0  ;;  %v208_v1 = vpop.f32.mrf.mxu1 }
 0x104   :  { %v280_v4 = vsel %vm276_vm0, 1.0, %v160_v0  ;;  %v296_v5 = vsel %vm276_vm0, 1.0, %v208_v1 }
 0x105   :  { %406 = vst [vmem:[#allocation7] sm:$0xff] %v456_v62  ;;  %414 = vst [vmem:[#allocation7 + $0x40] sm:$0xff] %v464_v63  ;;  %v162_v2 = vpop.f32.mrf.mxu0  ;;  %v210_v3 = vpop.f32.mrf.mxu1 }
 0x106   :  { %v281_v6 = vsel %vm630_vm1, 1.0, %v162_v2  ;;  %v297_v7 = vsel %vm630_vm1, 1.0, %v210_v3 }
 0x107   :  { %v457_v8 = vpack.c.bf16 %v281_v6, %v280_v4  ;;  %v465_v9 = vpack.c.bf16 %v297_v7, %v296_v5  ;;  %v166_v10 = vpop.f32.mrf.mxu0  ;;  %v214_v11 = vpop.f32.mrf.mxu1 }
 0x108   :  { %v282_v14 = vsel %vm276_vm0, 1.0, %v166_v10  ;;  %v298_v15 = vsel %vm276_vm0, 1.0, %v214_v11 }
 0x109   :  { %407 = vst [vmem:[#allocation7 + $0x8] sm:$0xff] %v457_v8  ;;  %415 = vst [vmem:[#allocation7 + $0x48] sm:$0xff] %v465_v9  ;;  %v168_v12 = vpop.f32.mrf.mxu0  ;;  %v216_v13 = vpop.f32.mrf.mxu1 }
 0x10a   :  { %v283_v16 = vsel %vm630_vm1, 1.0, %v168_v12  ;;  %v299_v17 = vsel %vm630_vm1, 1.0, %v216_v13 }
 0x10b   :  { %v458_v18 = vpack.c.bf16 %v283_v16, %v282_v14  ;;  %v466_v19 = vpack.c.bf16 %v299_v17, %v298_v15  ;;  %v172_v20 = vpop.f32.mrf.mxu0  ;;  %v220_v21 = vpop.f32.mrf.mxu1 }
 0x10c   :  { %v284_v24 = vsel %vm276_vm0, 1.0, %v172_v20  ;;  %v300_v25 = vsel %vm276_vm0, 1.0, %v220_v21 }
 0x10d   :  { %408 = vst [vmem:[#allocation7 + $0x10] sm:$0xff] %v458_v18  ;;  %416 = vst [vmem:[#allocation7 + $0x50] sm:$0xff] %v466_v19  ;;  %v174_v22 = vpop.f32.mrf.mxu0  ;;  %v222_v23 = vpop.f32.mrf.mxu1 }
 0x10e   :  { %v285_v26 = vsel %vm630_vm1, 1.0, %v174_v22  ;;  %v301_v27 = vsel %vm630_vm1, 1.0, %v222_v23 }
 0x10f   :  { %v459_v28 = vpack.c.bf16 %v285_v26, %v284_v24  ;;  %v467_v29 = vpack.c.bf16 %v301_v27, %v300_v25  ;;  %v178_v30 = vpop.f32.mrf.mxu0  ;;  %v226_v31 = vpop.f32.mrf.mxu1 }
 0x110   :  { %v286_v34 = vsel %vm276_vm0, 1.0, %v178_v30  ;;  %v302_v35 = vsel %vm276_vm0, 1.0, %v226_v31 }
 0x111   :  { %409 = vst [vmem:[#allocation7 + $0x18] sm:$0xff] %v459_v28  ;;  %417 = vst [vmem:[#allocation7 + $0x58] sm:$0xff] %v467_v29  ;;  %v180_v32 = vpop.f32.mrf.mxu0  ;;  %v228_v33 = vpop.f32.mrf.mxu1 }
 0x112   :  { %v287_v36 = vsel %vm630_vm1, 1.0, %v180_v32  ;;  %v303_v37 = vsel %vm630_vm1, 1.0, %v228_v33 }
 0x113   :  { %v460_v38 = vpack.c.bf16 %v287_v36, %v286_v34  ;;  %v468_v39 = vpack.c.bf16 %v303_v37, %v302_v35  ;;  %v184_v40 = vpop.f32.mrf.mxu0  ;;  %v232_v41 = vpop.f32.mrf.mxu1 }
 0x114   :  { %v288_v44 = vsel %vm276_vm0, 1.0, %v184_v40  ;;  %v304_v45 = vsel %vm276_vm0, 1.0, %v232_v41 }
 0x115   :  { %410 = vst [vmem:[#allocation7 + $0x20] sm:$0xff] %v460_v38  ;;  %418 = vst [vmem:[#allocation7 + $0x60] sm:$0xff] %v468_v39  ;;  %v186_v42 = vpop.f32.mrf.mxu0  ;;  %v234_v43 = vpop.f32.mrf.mxu1 }
 0x116   :  { %v289_v46 = vsel %vm630_vm1, 1.0, %v186_v42  ;;  %v305_v47 = vsel %vm630_vm1, 1.0, %v234_v43 }
 0x117   :  { %v461_v48 = vpack.c.bf16 %v289_v46, %v288_v44  ;;  %v469_v49 = vpack.c.bf16 %v305_v47, %v304_v45  ;;  %v190_v51 = vpop.f32.mrf.mxu0  ;;  %v238_v52 = vpop.f32.mrf.mxu1 }
 0x118   :  { %v290_v56 = vsel %vm276_vm0, 1.0, %v190_v51  ;;  %v306_v57 = vsel %vm276_vm0, 1.0, %v238_v52 }
 0x119   :  { %411 = vst [vmem:[#allocation7 + $0x28] sm:$0xff] %v461_v48  ;;  %419 = vst [vmem:[#allocation7 + $0x68] sm:$0xff] %v469_v49  ;;  %v192_v53 = vpop.f32.mrf.mxu0  ;;  %v240_v54 = vpop.f32.mrf.mxu1 }
 0x11a   :  { %v291_v58 = vsel %vm630_vm1, 1.0, %v192_v53  ;;  %v307_v59 = vsel %vm630_vm1, 1.0, %v240_v54 }
 0x11b   :  { %v462_v60 = vpack.c.bf16 %v291_v58, %v290_v56  ;;  %v470_v61 = vpack.c.bf16 %v307_v59, %v306_v57  ;;  %v196_v62 = vpop.f32.mrf.mxu0  ;;  %v244_v63 = vpop.f32.mrf.mxu1 }
 0x11c   :  { %v292_v2 = vsel %vm276_vm0, 1.0, %v196_v62  ;;  %v308_v3 = vsel %vm276_vm0, 1.0, %v244_v63 }
 0x11d   :  { %412 = vst [vmem:[#allocation7 + $0x30] sm:$0xff] %v462_v60  ;;  %420 = vst [vmem:[#allocation7 + $0x70] sm:$0xff] %v470_v61  ;;  %v198_v0 = vpop.f32.mrf.mxu0  ;;  %v246_v1 = vpop.f32.mrf.mxu1 }
 0x11e   :  { %v293_v4 = vsel %vm630_vm1, 1.0, %v198_v0  ;;  %v309_v5 = vsel %vm630_vm1, 1.0, %v246_v1 }
 0x11f   :  { %v463_v6 = vpack.c.bf16 %v293_v4, %v292_v2  ;;  %v471_v7 = vpack.c.bf16 %v309_v5, %v308_v3 }
 0x121   :  { %413 = vst [vmem:[#allocation7 + $0x38] sm:$0xff] %v463_v6  ;;  %421 = vst [vmem:[#allocation7 + $0x78] sm:$0xff] %v471_v7 }
 0x122   :  { %563 = shalt.err (!%p560_p0)
}
 0x123   :  { %433 = dma.vmem_to_hbm [thread:$0]  %s428_s1, 2048, %s706_s2, [#allocation4], %s579_s12, %s579_s12, %s580_s13  }
 0x124   :  { %576 = dma.done.wait [#allocation4], 2048  }
 0x125   :  { %577 = vsyncadd [#allocation4], 4294965248 }
 0x126   :  { %437 = vsyncpa [#allocation3], 1 }
 0x127   :  { %438 = vsyncpa [#allocation6], 1 }
 0x128   :  { %439 = vsyncpa [#allocation4], 1 }

</bundles_post_ra>
